<compile_context>
chip_gen: v7x
topology: tpu7x:2x2x1
jax: 0.10.0
libtpu: 0.0.40
codegen_flags: <defaults>
</compile_context>

<pallas_src>
import jax
import jax.numpy as jnp
from jax.experimental import pallas as pl
from jax.experimental.pallas import tpu as pltpu

C_IN = 1
C_OUT = 16
KSIZE = 6
STRIDE = 4
K_PAD = 8          # 6 taps + 1 bias row + 1 zero row  -> sublane multiple
LANE_TILE = 4096   # max lane tile along L_out (multiple of 128)
NB_MAX = 8         # max batch rows per grid step
BN_EPS = 1e-5


def _cdiv(a, b):
    return -(-a // b)


def _round_up(a, b):
    return _cdiv(a, b) * b


def _pick_nb(n, n_lane_tiles):
    """Largest divisor of n <= NB_MAX; prefer >= 2 total grid steps (v7x megacore)."""
    divisors = [d for d in range(1, min(n, NB_MAX) + 1) if n % d == 0]
    best = divisors[-1]
    if n_lane_tiles == 1:
        for d in reversed(divisors):
            if n // d >= 2:
                return d
    return best


def _conv_bn_relu_kernel(x_ref, w_ref, o_ref):
    # x_ref: (NB, K_PAD, TL)  im2col patches (taps 0..5, bias row of 1.0, zero row)
    # w_ref: (C_OUT, K_PAD)   BN-scale-folded weights; BN shift sits in the bias column
    # o_ref: (NB, C_OUT, TL)  output tile, lane-dense along L_out
    w = w_ref[...]
    for b in range(x_ref.shape[0]):            # NB is a small compile-time constant
        z = jnp.dot(w, x_ref[b], preferred_element_type=jnp.float32)   # (C_OUT, TL) on MXU
        o_ref[b] = jnp.maximum(z, 0.0).astype(o_ref.dtype)


def signlescale_cnn_module1(x, params):
    """Forward pass of SignlescaleCNN_Module1 (eval mode). x: (N, 1, L) float32, NCL layout."""
    N, Cin, L = x.shape
    assert Cin == C_IN
    L_out = (L - KSIZE) // STRIDE + 1
    assert L_out >= 1

    w = params["conv_w"].astype(jnp.float32)                       # (C_OUT, 1, KSIZE)
    gamma = params["bn_gamma"].astype(jnp.float32)
    beta = params["bn_beta"].astype(jnp.float32)
    rmean = params["bn_running_mean"].astype(jnp.float32)
    rvar = params["bn_running_var"].astype(jnp.float32)

    # Fold BN (running stats) into the weights; the shift becomes a bias column so the
    # whole conv+BN+ReLU epilogue is a single matmul followed by a max.
    inv_std = 1.0 / jnp.sqrt(rvar + BN_EPS)
    scale = gamma * inv_std                                        # (C_OUT,)
    shift = beta - rmean * scale                                   # (C_OUT,)
    w_eff = jnp.concatenate(
        [w.reshape(C_OUT, KSIZE) * scale[:, None],                 # scaled taps
         shift.reshape(C_OUT, 1),                                  # bias column
         jnp.zeros((C_OUT, K_PAD - KSIZE - 1), jnp.float32)],      # zero padding column(s)
        axis=1)                                                    # (C_OUT, K_PAD)

    # Lane tiling of L_out with bounded padding waste.
    n_tiles = _cdiv(L_out, LANE_TILE)
    if n_tiles == 1:
        TL = L_out                                                 # block == full dim: no pad/slice
    else:
        TL = _round_up(_cdiv(L_out, n_tiles), 128)
    L_pad = n_tiles * TL

    # im2col patches (N, K_PAD, L_*): patches[n, k, t] = x[n, 0, STRIDE*t + k] for k < 6,
    # row 6 = 1.0 (bias), row 7 = 0. Built as one fused expression; with allow_input_fusion
    # XLA fuses this producer into the pallas_call operand (no HBM materialization).
    span = (L_out - 1) * STRIDE + 1
    rows = [x[:, 0, k:k + span:STRIDE].astype(jnp.float32) for k in range(KSIZE)]
    rows.append(jnp.ones((N, L_out), jnp.float32))                 # bias row
    rows.append(jnp.zeros((N, L_out), jnp.float32))                # alignment row
    patches = jnp.stack(rows, axis=1)                              # (N, K_PAD, L_out)
    if L_pad != L_out:
        # Zero-padded columns (incl. bias row) -> padded outputs are exactly 0.
        patches = jnp.pad(patches, ((0, 0), (0, 0), (0, L_pad - L_out)))

    NB = _pick_nb(N, n_tiles)

    cost = pl.CostEstimate(
        flops=2 * N * L_pad * K_PAD * C_OUT,
        transcendentals=0,
        bytes_accessed=(N * K_PAD * L_pad + C_OUT * K_PAD + N * C_OUT * L_pad) * 4,
    )

    out = pl.pallas_call(
        _conv_bn_relu_kernel,
        out_shape=jax.ShapeDtypeStruct((N, C_OUT, L_pad), jnp.float32),
        grid_spec=pl.GridSpec(
            grid=(N // NB, n_tiles),
            in_specs=[
                pl.BlockSpec((NB, K_PAD, TL), lambda b, t: (b, 0, t)),   # streamed patch tile
                pl.BlockSpec((C_OUT, K_PAD), lambda b, t: (0, 0)),       # weights: VMEM-resident
            ],
            out_specs=pl.BlockSpec((NB, C_OUT, TL), lambda b, t: (b, 0, t)),
        ),
        compiler_params=pltpu.CompilerParams(
            dimension_semantics=("parallel", "parallel"),   # independent axes -> megacore on v7x
            allow_input_fusion=[True, False],               # fuse im2col producer into operand
        ),
        cost_estimate=cost,
    )(patches, w_eff)

    if L_pad != L_out:
        out = out[:, :, :L_out]
    return out                                               # (N, C_OUT, L_out), PyTorch NCL layout


def _ref_forward(x, params):
    """Pure-JAX reference (eval-mode Conv1d -> BN -> ReLU -> Dropout(identity))."""
    y = jax.lax.conv_general_dilated(
        x.astype(jnp.float32),
        params["conv_w"].astype(jnp.float32),
        window_strides=(STRIDE,),
        padding="VALID",
        dimension_numbers=("NCH", "OIH", "NCH"),
    )
    inv_std = 1.0 / jnp.sqrt(params["bn_running_var"] + BN_EPS)
    scale = (params["bn_gamma"] * inv_std)[None, :, None]
    shift = (params["bn_beta"] - params["bn_running_mean"] * params["bn_gamma"] * inv_std)[None, :, None]
    return jnp.maximum(y * scale + shift, 0.0)


def init_params(key):
    kw, kg, kb, km, kv = jax.random.split(key, 5)
    return {
        "conv_w": jax.random.normal(kw, (C_OUT, C_IN, KSIZE), jnp.float32) * 0.3,
        "bn_gamma": 1.0 + 0.1 * jax.random.normal(kg, (C_OUT,), jnp.float32),
        "bn_beta": 0.1 * jax.random.normal(kb, (C_OUT,), jnp.float32),
        "bn_running_mean": 0.1 * jax.random.normal(km, (C_OUT,), jnp.float32),
        "bn_running_var": 1.0 + 0.1 * jax.random.uniform(kv, (C_OUT,), jnp.float32),
    }


if __name__ == "__main__":
    key = jax.random.PRNGKey(0)
    k_param, k_x = jax.random.split(key)
    params = init_params(k_param)

    # Small example: batch=2, C_in=1 (fixed by module), L=70 -> L_out=(70-6)//4+1=17.
    x = jax.random.normal(k_x, (2, C_IN, 70), dtype=jnp.float32)

    out = signlescale_cnn_module1(x, params)
    out = jax.block_until_ready(out)

    assert out.shape == (2, C_OUT, 17), out.shape
    assert bool(jnp.all(out >= 0.0))        # ReLU

    ref = _ref_forward(x, params)
    max_err = float(jnp.max(jnp.abs(out - ref)))
    assert jnp.allclose(out, ref, atol=1e-4, rtol=1e-4), max_err

    print("KERNEL_OK")
</pallas_src>

<mosaic_0001>
module attributes {stable_mosaic.version = 11 : i64} {
  func.func @_conv_bn_relu_kernel(%arg0: i32, %arg1: i32, %arg2: memref<1x8x17xf32, #tpu.memory_space<vmem>>, %arg3: memref<16x8xf32, #tpu.memory_space<vmem>>, %arg4: memref<1x16x17xf32, #tpu.memory_space<vmem>>) attributes {dimension_semantics = [#tpu.dimension_semantics<parallel>, #tpu.dimension_semantics<parallel>], iteration_bounds = array<i64: 2, 1>, scalar_prefetch = 0 : i64, scratch_operands = 0 : i64, tpu.core_type = #tpu.core_type<tc>, window_params = [{transform_indices = @transform_0, window_bounds = array<i64: 1, 8, 17>}, {pipeline_mode = #tpu.pipeline_mode<synchronous>, transform_indices = @transform_1, window_bounds = array<i64: 16, 8>}, {transform_indices = @transform_2, window_bounds = array<i64: 1, 16, 17>}]} {
    %c0 = arith.constant 0 : index
    %c0_0 = arith.constant 0 : index
    %0 = vector.load %arg3[%c0, %c0_0] : memref<16x8xf32, #tpu.memory_space<vmem>>, vector<16x8xf32>
    %c0_1 = arith.constant 0 : index
    %c0_2 = arith.constant 0 : index
    %c0_3 = arith.constant 0 : index
    %1 = vector.load %arg2[%c0_1, %c0_2, %c0_3] : memref<1x8x17xf32, #tpu.memory_space<vmem>>, vector<1x8x17xf32>
    %2 = vector.shape_cast %1 : vector<1x8x17xf32> to vector<8x17xf32>
    %cst = arith.constant dense<0.000000e+00> : vector<16x17xf32>
    %3 = tpu.matmul %0, %2, %cst {dimension_numbers = #tpu.dot_dimension_numbers<[1], [0], [0], [1], [0, 0, 1, 1], [], []>} : vector<16x8xf32>, vector<8x17xf32>, vector<16x17xf32> -> vector<16x17xf32>
    %cst_4 = arith.constant 0.000000e+00 : f32
    %4 = vector.broadcast %cst_4 : f32 to vector<16x17xf32>
    %5 = arith.maximumf %3, %4 : vector<16x17xf32>
    %c0_5 = arith.constant 0 : index
    %c0_6 = arith.constant 0 : index
    %c0_7 = arith.constant 0 : index
    %6 = vector.load %arg4[%c0_5, %c0_6, %c0_7] : memref<1x16x17xf32, #tpu.memory_space<vmem>>, vector<1x16x17xf32>
    %7 = vector.shape_cast %6 : vector<1x16x17xf32> to vector<16x17xf32>
    %8 = vector.shape_cast %5 : vector<16x17xf32> to vector<1x16x17xf32>
    tpu.vector_store %arg4[%c0_5, %c0_6, %c0_7], %8 {strides = array<i32>} : memref<1x16x17xf32, #tpu.memory_space<vmem>>, vector<1x16x17xf32>,
    return
  }
  func.func @transform_0(%arg0: i32, %arg1: i32) -> (i32, i32, i32) {
    %c0_i32 = arith.constant 0 : i32
    %c0_i32_0 = arith.constant 0 : i32
    return %arg0, %c0_i32, %arg1 : i32, i32, i32
  }
  func.func @transform_1(%arg0: i32, %arg1: i32) -> (i32, i32) {
    %c0_i32 = arith.constant 0 : i32
    %c0_i32_0 = arith.constant 0 : i32
    %c0_i32_1 = arith.constant 0 : i32
    return %c0_i32, %c0_i32_0 : i32, i32
  }
  func.func @transform_2(%arg0: i32, %arg1: i32) -> (i32, i32, i32) {
    %c0_i32 = arith.constant 0 : i32
    %c0_i32_0 = arith.constant 0 : i32
    return %arg0, %c0_i32, %arg1 : i32, i32, i32
  }
}

</mosaic_0001>

<bundles_post_ra>
// kernel: tpu_custom_call.1
= control target key start
LH: loop header
LB: loop body
LE: loop exit
PB: predicated region body
PF: predicated region fallthrough
CT: control target
= control target key end

     0   :  { %7 = vsyncpa [#allocation3], 0  ;;  %s643_s0 = inlined_call_operand.vmem [shape: f32[2,8,17], index: 0, kind: input, shape index: {}]   ;;  %s644_s1 = inlined_call_operand.vmem [shape: f32[16,8], index: 1, kind: input, shape index: {}]   ;;  %s645_s2 = inlined_call_operand.hbm [shape: f32[2,16,17], index: 2, kind: output, shape index: {}]  }
   0x1   :  { %9 = vsyncpa [#allocation3 + $0x1], 0  ;;  %s522_s9 = smov 0   ;;  %s524_s10 = smov 0  }
   0x2   :  { %s526_s11 = smov 0   ;;  %s528_s12 = smov 0  }
   0x3   :  { %s530_s13 = smov 0   ;;  %s532_s14 = smov 0  }
   0x4 LB: > { %s344_s15 = sadd.s32 4294967295, %s502_s14   ;;  %s345_s16 = sadd.s32 4294967294, %s502_s14   ;;  %s502_s14 = sphi %s532_s14, %s15_s14   ;;  %s498_s13 = sphi %s530_s13, %s652_s13   ;;  %s494_s12 = sphi %s528_s12, %s651_s12   ;;  %s490_s11 = sphi %s526_s11, %s650_s11   ;;  %s486_s10 = sphi %s524_s10, %s649_s10   ;;  %s482_s9 = sphi %s522_s9, %s648_s9  }
   0x5   : > { %s27_s17 = sadd.s32 1, %s498_s13  ;;  %s85_s18 = sadd.s32 1, %s490_s11 }
   0x6   : > { %p29_p0 = scmp.ge.s32.totalorder %s27_s17, 2  ;;  %p95_p1 = scmp.ne.s32.totalorder %s490_s11, %s486_s10 }
   0x7   : > { %p96_p2 = scmp.eq.s32.totalorder %s344_s15, 1  ;;  %p101_p3 = scmp.ne.s32.totalorder %s486_s10, %s482_s9 }
   0x8   : > { %s654_s17 = smov (%p29_p0, %s27_s17), 0  ;;  %p102_p5 = scmp.eq.s32.totalorder %s345_s16, 1 }
   0x9   : > { %p562_p4 = por %p96_p2, %p95_p1  ;;  %s80_s20 = ssub.s32 %s498_s13, %s654_s17 }
   0xa   : > { %p348_p6 = scmp.ge.s32.totalorder %s502_s14, 1  ;;  %p83_p7 = scmp.eq.s32.totalorder %s80_s20, 0 }
   0xb   : > { %p569_p8 = por %p102_p5, %p101_p3  ;;  %p133_p9 = scmp.lt.s32.totalorder %s502_s14, 3 }
   0xc   : > { %s575_s22 = scalar_select %p83_p7, %s490_s11, %s85_s18  }
   0xd   : > { %p134_p10 = pnand %p348_p6, %p133_p9 }
   0xe   : > { %p157_p11 = scmp.lt.s32.totalorder (!%p134_p10), %s494_s12, 1  ;;  %v164_v0 = vld [vmem:[%s644_s1] sm:$0xff] (!%p134_p10)  ;;  %vm167_vm0 = vcmask (!%p134_p10), 64512   ;;  %v165_v2 = vld [vmem:[%s644_s1 + $0x8] sm:$0xff] (!%p134_p10)  ;;  %s154_s4 = sand.u32 (!%p134_p10), 1, %s486_s10   ;;  %vm251_vm1 = vcmask (!%p134_p10), 138240  }
   0xf   : > { %137 = sbr.rel (%p134_p10) target bundleno = 259 (0x103), region = 28  ;;  %364 = vmatprep.mubr.msk.f32.mxu0 (!%p134_p10), %vm167_vm0, %v164_v0  ;;  %s349_s5 = sshll.u32 (!%p134_p10), %s154_s4, 4 }
  0x10   : > { %s156_s6 = scalar_lea.vmem (!%p134_p10), [#allocation2], %s349_s5  ;;  %s358_s8 = sshll.u32 (!%p134_p10), %s494_s12, 8 }
  0x11   : > { %s269_s7 = sshll.u32 (!%p134_p10), %s156_s6, 4  ;;  %s595_s18 = scalar_lea.hbm (!%p134_p10), %s645_s2, %s358_s8  ;;  %s590_s7 = int_to_ptr.vmem [resolvable:$true] %s269_s7 }
  0x12   : > { %s597_s20 = scalar_lea.sflag (!%p134_p10), [#allocation3], %s154_s4  ;;  %s504_s23 = smov (!%p134_p10), [#allocation2]  }
  0x13   : > { %s428_s24 = sshll.u32 (!%p134_p10), %s504_s23, 4  ;;  %s429_s24 = int_to_ptr.vmem [resolvable:$false] %s428_s24 }
  0x14   : > { %p431_p1 = scmp.lt.s32.totalorder (!%p134_p10), %s590_s7, %s429_s24 }
  0x16   : > { %s158_s25 = scalar_select %p157_p11, %s494_s12, 1 }
  0x17   : > { %s424_s12 = scalar_lea.vmem %s590_s7, 256 }
  0x18   : > { %s350_s26 = sshll.u32 %s158_s25, 3  ;;  %p425_p12 = scmp.ne.s32.totalorder %s590_s7, %s424_s12 }
  0x19   : > { %s163_s29 = scalar_lea.vmem %s643_s0, %s350_s26  ;;  %s430_s25 = scalar_lea.vmem %s429_s24, 512 }
  0x1a   : > { %v166_v1 = vld [vmem:[%s163_s29] sm:$0xff]  ;;  %p426_p13 = pnand %p425_p12, %p562_p4  ;;  %p432_p2 = scmp.lt.s32.totalorder %s430_s25, %s424_s12 }
  0x1b   : > { %362 = vmatprep.subr.mxu0 %v166_v1 }
  0x1c   : > { %363 = vmatpush3.msra.mxu0 %v166_v1  ;;  %p427_p0 = pneg %p426_p13  ;;  %p433_p3 = por %p432_p2, %p431_p1 }
  0x1d   : > { %365 = vmatmul.mubr.msk.f32.vlgmr.msra.gmra.mrb[0].mxu0 %vm167_vm0, %v165_v2 }
  0x1e   : > { %p434_p5 = pnand %p433_p3, %p427_p0 }
  0xf0   : > { %v366_v3 = vpop.f32.mrb[0].mxu0 }
  0xf1   : > { %v250_v4 = vmax.f32 %v366_v3, 0.0  ;;  %v240_v5 = vpop.f32.mrb[1].mxu0 }
  0xf2   : > { %v249_v6 = vmax.f32 %v240_v5, 0.0 }
  0xf3   : > { %253 = vst.msk [vmem:[%s156_s6 + $0x8] sm:$0xff] %vm251_vm1, %v250_v4 }
  0xf4   : > { %252 = vst.msk [vmem:[%s156_s6] sm:$0xff] %vm251_vm1, %v249_v6 }
  0xf5   : > { %437 = shalt.err (!%p434_p5)
}
  0xf6   : > { %s438_s26 = scalar_lea.hbm %s595_s18, 256  ;;  %s442_s29 = scalar_lea.hbm %s645_s2, 512 }
  0xf7   : > { %p439_p6 = scmp.ne.s32.totalorder %s595_s18, %s438_s26  ;;  %p443_p10 = scmp.lt.u32.totalorder %s595_s18, %s645_s2 }
  0xf8   : > { %p444_p11 = scmp.lt.u32.totalorder %s442_s29, %s438_s26  ;;  %p446_p13 = scmp.lt.u32.totalorder %s438_s26, %s595_s18 }
  0xf9   : > { %p440_p7 = pnand %p439_p6, %p562_p4 }
  0xfa   : > { %p445_p12 = por %p444_p11, %p443_p10 }
  0xfb   : > { %p441_p9 = pneg %p440_p7 }
  0xfc   : > { %p447_p0 = por %p446_p13, %p445_p12 }
  0xfe   : > { %p448_p1 = pnand %p447_p0, %p441_p9 }
 0x100   : > { %451 = shalt.err (!%p448_p1)
}
 0x101   : > { %s505_s4 = smov 128   ;;  %s506_s5 = smov 8  }
 0x102   : > { %367 = dma.vmem_to_hbm [thread:$0]  (%p562_p4), %s590_s7, 256, %s595_s18, %s597_s20, %s505_s4, %s505_s4, %s506_s5  }
 0x103 PF: > { %p373_p2 = scmp.ge.s32.totalorder %s502_s14, 2  ;;  %s284_s6 = sand.u32 1, %s482_s9  }
 0x104   : > { %s285_s8 = scalar_lea.sflag [#allocation3], %s284_s6 }
 0x105   : > { %p370_p3 = pnand %p373_p2, %p569_p8 }
 0x107   : > { %477 = dma.done.wait (!%p370_p3), %s285_s8, 256  }
 0x108   : > { %479 = vsyncadd (!%p370_p3), %s285_s8, 4294967040  ;;  %s15_s14 = sadd.s32 1, %s502_s14   ;;  %s648_s9 = smov %s486_s10 }
 0x109   : > { %p12_p5 = scmp.ge.s32.totalorder %s15_s14, 4   ;;  %s649_s10 = smov %s490_s11 }
 0x10a   : > { %s650_s11 = smov %s575_s22  ;;  %s651_s12 = smov %s498_s13 }
 0x10b   : > { %s652_s13 = smov %s654_s17  ;;  %14 = sbr.rel (!%p12_p5) target bundleno = 4 (0x4), region = 63 }
 0x112   :  { %290 = vsyncpa [#allocation3], 1 }
 0x113   :  { %292 = vsyncpa [#allocation3 + $0x1], 1 }

</bundles_post_ra>
